<compile_context>
chip_gen: v5e
topology: v5e:2x2
jax: 0.10.0
libtpu: 0.0.40
codegen_flags: <defaults>
</compile_context>

<pallas_src>
import functools

import jax
import jax.numpy as jnp
from jax.experimental import pallas as pl
from jax.experimental.pallas import tpu as pltpu


def _label_smooth_kernel(logits_ref, targets_ref, out_ref, acc_ref, *,
                         smoothing, inv_batch):
    # logits_ref:  (tb, C) float32   one batch tile, full class dim (lanes)
    # targets_ref: (tb, 1) int32
    # out_ref:     (1, 1)  float32   scalar loss (written on last grid step)
    # acc_ref:     (1, 1)  float32   VMEM accumulator across batch tiles
    b = pl.program_id(0)

    @pl.when(b == 0)
    def _init():
        acc_ref[...] = jnp.zeros_like(acc_ref)

    x = logits_ref[...]
    if x.dtype != jnp.float32:          # trace-time check only; no-op for f32 inputs
        x = x.astype(jnp.float32)
    t = targets_ref[...]                # (tb, 1) int32

    _, num_classes = x.shape

    # Numerically stable log-softmax along the class (lane) axis.
    m = jnp.max(x, axis=-1, keepdims=True)
    z = x - m
    lse = jnp.log(jnp.sum(jnp.exp(z), axis=-1, keepdims=True))
    lp = z - lse                        # (tb, C) log-probabilities

    # One-hot smoothing weights folded algebraically:
    #   w[i, j]        = s / (C - 1)
    #   w[i, target_i] = 1 - s
    #   sum_j w*lp     = s/(C-1) * (S_i - lp_t_i) + (1 - s) * lp_t_i
    classes = jax.lax.broadcasted_iota(jnp.int32, lp.shape, 1)
    lp_t = jnp.sum(jnp.where(t == classes, lp, 0.0), axis=-1, keepdims=True)  # (tb, 1)
    lp_sum = jnp.sum(lp, axis=-1, keepdims=True)                              # (tb, 1)

    uni = smoothing / (num_classes - 1.0)
    per_example = -(uni * (lp_sum - lp_t) + (1.0 - smoothing) * lp_t)         # (tb, 1)

    acc_ref[...] += jnp.sum(per_example, axis=0, keepdims=True)               # (1, 1)

    @pl.when(b == pl.num_programs(0) - 1)
    def _finalize():
        out_ref[...] = acc_ref[...] * inv_batch


def label_smooth_loss(logits, targets, *, smoothing=0.1, batch_tile=8):
    """Pallas TPU implementation of LabelSmoothLoss.forward."""
    B, C = logits.shape
    if B % batch_tile != 0:
        batch_tile = B                  # fall back to a single full-batch tile
    grid = (B // batch_tile,)
    targets2d = targets.astype(jnp.int32).reshape(B, 1)

    kernel = functools.partial(
        _label_smooth_kernel,
        smoothing=float(smoothing),
        inv_batch=1.0 / float(B),
    )

    out = pl.pallas_call(
        kernel,
        out_shape=jax.ShapeDtypeStruct((1, 1), jnp.float32),
        grid_spec=pltpu.PrefetchScalarGridSpec(
            num_scalar_prefetch=0,
            grid=grid,
            in_specs=[
                pl.BlockSpec((batch_tile, C), lambda i: (i, 0)),
                pl.BlockSpec((batch_tile, 1), lambda i: (i, 0)),
            ],
            out_specs=pl.BlockSpec((1, 1), lambda i: (0, 0)),
            scratch_shapes=[pltpu.VMEM((1, 1), jnp.float32)],
        ),
        compiler_params=pltpu.CompilerParams(
            dimension_semantics=("arbitrary",),   # reduction over batch tiles
        ),
    )(logits, targets2d)
    return out[0, 0]


def label_smooth_loss_ref(logits, targets, smoothing=0.1):
    # Pure-JAX reference mirroring the PyTorch forward exactly.
    C = logits.shape[-1]
    log_prob = jax.nn.log_softmax(logits, axis=-1)
    weight = jnp.full(logits.shape, smoothing / (C - 1.0), dtype=logits.dtype)
    onehot = jax.nn.one_hot(targets, C, dtype=logits.dtype)
    weight = jnp.where(onehot > 0, 1.0 - smoothing, weight)
    return jnp.mean(jnp.sum(-weight * log_prob, axis=-1))


if __name__ == "__main__":
    # Small shapes consistent with the module: input (batch, num_classes), target (batch,)
    B, C = 16, 512
    smoothing = 0.1

    key = jax.random.PRNGKey(0)
    k_logits, k_targets = jax.random.split(key)
    logits = jax.random.normal(k_logits, (B, C), dtype=jnp.float32)
    targets = jax.random.randint(k_targets, (B,), 0, C, dtype=jnp.int32)

    loss = label_smooth_loss(logits, targets, smoothing=smoothing)
    jax.block_until_ready(loss)

    ref = label_smooth_loss_ref(logits, targets, smoothing)
    assert jnp.allclose(loss, ref, rtol=1e-5, atol=1e-5), (loss, ref)

    print("KERNEL_OK")
</pallas_src>

<mosaic_0001>
module attributes {stable_mosaic.version = 11 : i64} {
  func.func @_label_smooth_kernel(%arg0: i32, %arg1: memref<8x512xf32, #tpu.memory_space<vmem>>, %arg2: memref<8x1xi32, #tpu.memory_space<vmem>>, %arg3: memref<1x1xf32, #tpu.memory_space<vmem>>, %arg4: memref<1x1xf32, #tpu.memory_space<vmem>>) attributes {dimension_semantics = [#tpu.dimension_semantics<arbitrary>], iteration_bounds = array<i64: 2>, scalar_prefetch = 0 : i64, scratch_operands = 1 : i64, tpu.core_type = #tpu.core_type<tc>, window_params = [{transform_indices = @transform_0, window_bounds = array<i64: 8, 512>}, {transform_indices = @transform_1, window_bounds = array<i64: 8, 1>}, {pipeline_mode = #tpu.pipeline_mode<synchronous>, transform_indices = @transform_2, window_bounds = array<i64: 1, 1>}]} {
    %c0_i32 = arith.constant 0 : i32
    %0 = arith.cmpi eq, %arg0, %c0_i32 : i32
    %1 = arith.extui %0 : i1 to i32
    %c0_i32_0 = arith.constant 0 : i32
    %2 = arith.cmpi ne, %1, %c0_i32_0 : i32
    scf.if %2 {
      %cst_17 = arith.constant 0.000000e+00 : f32
      %40 = vector.broadcast %cst_17 : f32 to vector<1x1xf32>
      %c0_18 = arith.constant 0 : index
      %c0_19 = arith.constant 0 : index
      %41 = vector.load %arg4[%c0_18, %c0_19] : memref<1x1xf32, #tpu.memory_space<vmem>>, vector<1x1xf32>
      tpu.vector_store %arg4[%c0_18, %c0_19], %40 {strides = array<i32>} : memref<1x1xf32, #tpu.memory_space<vmem>>, vector<1x1xf32>,
    } else {
    }
    %c0 = arith.constant 0 : index
    %c0_1 = arith.constant 0 : index
    %3 = vector.load %arg1[%c0, %c0_1] : memref<8x512xf32, #tpu.memory_space<vmem>>, vector<8x512xf32>
    %c0_2 = arith.constant 0 : index
    %c0_3 = arith.constant 0 : index
    %4 = vector.load %arg2[%c0_2, %c0_3] : memref<8x1xi32, #tpu.memory_space<vmem>>, vector<8x1xi32>
    %cst = arith.constant dense<0xFF800000> : vector<8xf32>
    %5 = vector.multi_reduction <maximumf>, %3, %cst [1] : vector<8x512xf32> to vector<8xf32>
    %6 = vector.shape_cast %5 : vector<8xf32> to vector<8x1xf32>
    %7 = vector.broadcast %6 : vector<8x1xf32> to vector<8x512xf32>
    %8 = arith.subf %3, %7 : vector<8x512xf32>
    %9 = math.exp %8 : vector<8x512xf32>
    %cst_4 = arith.constant dense<0.000000e+00> : vector<8xf32>
    %10 = vector.multi_reduction <add>, %9, %cst_4 [1] : vector<8x512xf32> to vector<8xf32>
    %11 = vector.shape_cast %10 : vector<8xf32> to vector<8x1xf32>
    %12 = math.log %11 : vector<8x1xf32>
    %13 = vector.broadcast %12 : vector<8x1xf32> to vector<8x512xf32>
    %14 = arith.subf %8, %13 : vector<8x512xf32>
    %15 = tpu.iota {dimensions = array<i32: 1>} : vector<8x512xi32>
    %16 = vector.broadcast %4 : vector<8x1xi32> to vector<8x512xi32>
    %17 = arith.cmpi eq, %16, %15 : vector<8x512xi32>
    %cst_5 = arith.constant 0.000000e+00 : f32
    %18 = vector.broadcast %cst_5 : f32 to vector<8x512xf32>
    %19 = arith.select %17, %14, %18 : vector<8x512xi1>, vector<8x512xf32>
    %cst_6 = arith.constant dense<0.000000e+00> : vector<8xf32>
    %20 = vector.multi_reduction <add>, %19, %cst_6 [1] : vector<8x512xf32> to vector<8xf32>
    %21 = vector.shape_cast %20 : vector<8xf32> to vector<8x1xf32>
    %cst_7 = arith.constant dense<0.000000e+00> : vector<8xf32>
    %22 = vector.multi_reduction <add>, %14, %cst_7 [1] : vector<8x512xf32> to vector<8xf32>
    %23 = vector.shape_cast %22 : vector<8xf32> to vector<8x1xf32>
    %24 = arith.subf %23, %21 : vector<8x1xf32>
    %cst_8 = arith.constant 1.95694724E-4 : f32
    %25 = vector.broadcast %cst_8 : f32 to vector<8x1xf32>
    %26 = arith.mulf %25, %24 : vector<8x1xf32>
    %cst_9 = arith.constant 0.899999976 : f32
    %27 = vector.broadcast %cst_9 : f32 to vector<8x1xf32>
    %28 = arith.mulf %27, %21 : vector<8x1xf32>
    %29 = arith.addf %26, %28 : vector<8x1xf32>
    %cst_10 = arith.constant 0.000000e+00 : f32
    %30 = vector.broadcast %cst_10 : f32 to vector<8x1xf32>
    %31 = arith.subf %30, %29 : vector<8x1xf32>
    %c0_11 = arith.constant 0 : index
    %c0_12 = arith.constant 0 : index
    %32 = vector.load %arg4[%c0_11, %c0_12] : memref<1x1xf32, #tpu.memory_space<vmem>>, vector<1x1xf32>
    %cst_13 = arith.constant dense<0.000000e+00> : vector<1xf32>
    %33 = vector.multi_reduction <add>, %31, %cst_13 [0] : vector<8x1xf32> to vector<1xf32>
    %34 = vector.shape_cast %33 : vector<1xf32> to vector<1x1xf32>
    %35 = arith.addf %32, %34 : vector<1x1xf32>
    %c0_14 = arith.constant 0 : index
    %c0_15 = arith.constant 0 : index
    %36 = vector.load %arg4[%c0_14, %c0_15] : memref<1x1xf32, #tpu.memory_space<vmem>>, vector<1x1xf32>
    tpu.vector_store %arg4[%c0_14, %c0_15], %35 {strides = array<i32>} : memref<1x1xf32, #tpu.memory_space<vmem>>, vector<1x1xf32>,
    %c1_i32 = arith.constant 1 : i32
    %37 = arith.cmpi eq, %arg0, %c1_i32 : i32
    %38 = arith.extui %37 : i1 to i32
    %c0_i32_16 = arith.constant 0 : i32
    %39 = arith.cmpi ne, %38, %c0_i32_16 : i32
    scf.if %39 {
      %c0_17 = arith.constant 0 : index
      %c0_18 = arith.constant 0 : index
      %40 = vector.load %arg4[%c0_17, %c0_18] : memref<1x1xf32, #tpu.memory_space<vmem>>, vector<1x1xf32>
      %cst_19 = arith.constant 6.250000e-02 : f32
      %41 = vector.broadcast %cst_19 : f32 to vector<1x1xf32>
      %42 = arith.mulf %40, %41 : vector<1x1xf32>
      %c0_20 = arith.constant 0 : index
      %c0_21 = arith.constant 0 : index
      %43 = vector.load %arg3[%c0_20, %c0_21] : memref<1x1xf32, #tpu.memory_space<vmem>>, vector<1x1xf32>
      tpu.vector_store %arg3[%c0_20, %c0_21], %42 {strides = array<i32>} : memref<1x1xf32, #tpu.memory_space<vmem>>, vector<1x1xf32>,
    } else {
    }
    return
  }
  func.func @transform_0(%arg0: i32) -> (i32, i32) {
    %c0_i32 = arith.constant 0 : i32
    %c0_i32_0 = arith.constant 0 : i32
    return %arg0, %c0_i32 : i32, i32
  }
  func.func @transform_1(%arg0: i32) -> (i32, i32) {
    %c0_i32 = arith.constant 0 : i32
    %c0_i32_0 = arith.constant 0 : i32
    return %arg0, %c0_i32 : i32, i32
  }
  func.func @transform_2(%arg0: i32) -> (i32, i32) {
    %c0_i32 = arith.constant 0 : i32
    %c0_i32_0 = arith.constant 0 : i32
    %c0_i32_1 = arith.constant 0 : i32
    return %c0_i32, %c0_i32_0 : i32, i32
  }
}

</mosaic_0001>

<bundles_post_ra>
// kernel: tpu_custom_call.1
= control target key start
LH: loop header
LB: loop body
LE: loop exit
PB: predicated region body
PF: predicated region fallthrough
CT: control target
= control target key end

     0   :  { %7 = vsyncpa [#allocation4], 0  ;;  %s617_s0 = inlined_call_operand.hbm [shape: f32[16,512], index: 0, kind: input, shape index: {}]   ;;  %s618_s1 = inlined_call_operand.vmem [shape: s32[16,1], index: 1, kind: input, shape index: {}]   ;;  %s619_s2 = inlined_call_operand.hbm [shape: f32[1,1], index: 2, kind: output, shape index: {}]  }
   0x1   :  { %9 = vsyncpa [#allocation4 + $0x1], 0 }
   0x2   :  { %10 = vsyncpa [#allocation5], 0  ;;  %s517_s9 = smov 0   ;;  %s519_s10 = smov 0  }
   0x3   :  { %s521_s11 = smov 0   ;;  %s523_s12 = smov 0  }
   0x4 LB: > { %s536_s13 = sadd.s32 4294967295, %s497_s12   ;;  %s539_s14 = sadd.s32 1, %s497_s12   ;;  %s497_s12 = sphi %s523_s12, %s626_s12   ;;  %s493_s11 = sphi %s521_s11, %s625_s11   ;;  %s489_s10 = sphi %s519_s10, %s624_s10   ;;  %s485_s9 = sphi %s517_s9, %s623_s9  }
   0x5   : > { %s20_s15 = ssub.s32 %s497_s12, %s539_s14  ;;  %s23_s16 = sadd.s32 1, %s493_s11 }
   0x6   : > { %p21_p0 = scmp.eq.s32.totalorder %s20_s15, 0  ;;  %p30_p1 = scmp.ne.s32.totalorder %s493_s11, %s489_s10 }
   0x7   : > { %p31_p2 = scmp.eq.s32.totalorder %s497_s12, 0  ;;  %p36_p3 = scmp.ne.s32.totalorder %s489_s10, %s485_s9 }
   0x8   : > { %s549_s17 = scalar_select %p21_p0, %s493_s11, %s23_s16  }
   0x9   : > { %p551_p4 = por %p31_p2, %p30_p1  ;;  %p37_p5 = scmp.eq.s32.totalorder %s536_s13, 0 }
   0xa   : > { %p351_p6 = scmp.lt.s32.totalorder %s497_s12, 2  ;;  %s107_s20 = sand.u32 1, %s493_s11  }
   0xb   : > { %p557_p7 = por %p37_p5, %p36_p3  ;;  %s328_s21 = sshll.u32 %s107_s20, 5 }
   0xc   : > { %s340_s22 = sshll.u32 %s497_s12, 5  ;;  %s111_s26 = scalar_lea.vmem [#allocation3], %s328_s21 }
   0xd   : > { %s116_s25 = scalar_lea.hbm %s617_s0, %s340_s22  ;;  %s120_s27 = sshll.u32 %s111_s26, 4  ;;  %s121_s27 = int_to_ptr.vmem [resolvable:$true] %s120_s27 }
   0xe   : > { %s118_s28 = sshll.u32 %s116_s25, 4  ;;  %p568_p8 = pnand %p351_p6, %p551_p4  ;;  %s119_s28 = int_to_ptr.hbm [resolvable:$true] %s118_s28 }
   0xf   : > { %p331_p9 = scmp.ge.s32.totalorder %s497_s12, 1  ;;  %p132_p10 = scmp.lt.s32.totalorder %s497_s12, 3 }
  0x10   : > { %s108_s30 = scalar_lea.sflag [#allocation4], %s107_s20  ;;  %s401_s3 = sshra.s32 %s119_s28, 4  ;;  %s402_s3 = int_to_ptr.hbm [resolvable:$true] %s401_s3 }
  0x11   : > { %s403_s4 = scalar_lea.hbm %s402_s3, 32  ;;  %p405_p12 = pneg %p568_p8 }
  0x12   : > { %p404_p11 = scmp.ne.s32.totalorder %s402_s3, %s403_s4  ;;  %s408_s7 = scalar_lea.hbm %s617_s0, 64 }
  0x13   : > { %p409_p1 = scmp.lt.s32.totalorder %s402_s3, %s617_s0  ;;  %p410_p2 = scmp.lt.s32.totalorder %s408_s7, %s403_s4 }
  0x14   : > { %p406_p13 = pnand %p405_p12, %p404_p11 }
  0x15   : > { %p411_p3 = por %p410_p2, %p409_p1 }
  0x16   : > { %p407_p0 = pneg %p406_p13 }
  0x18   : > { %p412_p4 = pnand %p411_p3, %p407_p0 }
  0x1a   : > { %415 = shalt.err (!%p412_p4)
}
  0x1b   : > { %350 = dma.hbm_to_vmem [thread:$0]  (!%p568_p8), %s119_s28, 512, %s121_s27, %s108_s30  }
  0x1c   : > { %p133_p5 = pnand %p331_p9, %p132_p10 }
  0x1d   : > { %s138_s15 = sand.u32 (!%p133_p5), 1, %s489_s10  }
  0x1e   : > { %136 = sbr.rel (%p133_p5) target bundleno = 474 (0x1da), region = 28  ;;  %s332_s16 = sshll.u32 (!%p133_p5), %s138_s15, 5 }
  0x1f   : > { %s139_s18 = scalar_lea.sflag (!%p133_p5), [#allocation4], %s138_s15  ;;  %s142_s20 = scalar_lea.vmem (!%p133_p5), [#allocation3], %s332_s16 }
  0x23   : > { %476 = dma.done.wait (%p557_p7), %s139_s18, 512  }
  0x24   : > { %478 = vsyncadd (%p557_p7), %s139_s18, 4294966784  ;;  %p163_p6 = scmp.lt.s32.totalorder %s536_s13, 1  ;;  %p334_p8 = scmp.ne.s32.totalorder %s536_s13, 0 }
  0x26   : > { %s164_s21 = scalar_select %p163_p6, %s536_s13, 1 }
  0x27   : > { %170 = sbr.rel (%p334_p8) target bundleno = 46 (0x2e), region = 36 }
  0x28   : > { %s333_s22 = sshll.u32 %s164_s21, 3 }
  0x29   : > { %s166_s24 = scalar_lea.vmem %s618_s1, %s333_s22 }
  0x2c   : > { %vm171_vm0 = vcmask 0   ;;  %v499_v0 = vmov 0.0  }
  0x2d   : > { %172 = vst.msk [vmem:[#allocation2] sm:$0x1] %vm171_vm0, %v499_v0 }
  0x2e PF: > { %v173_v1 = vld [vmem:[%s142_s20] sm:$0xff]  ;;  %v174_v2 = vld [vmem:[%s142_s20 + $0x8] sm:$0xff]  ;;  %v175_v3 = vld [vmem:[%s142_s20 + $0x10] sm:$0xff]  ;;  %v500_v9 = vmov 0   ;;  %v206_v26 = vlaneseq  ;;  %vm245_vm5 = vcmask 0   ;;  %p335_p7 = scmp.ne.s32.totalorder %s536_s13, 1 }
  0x2f   : > { %v176_v4 = vld [vmem:[%s142_s20 + $0x18] sm:$0xff]  ;;  %v178_v5 = vmax.f32 %v173_v1, %v174_v2  ;;  %389 = vset.pattern.permute.xlu1 %v500_v9  ;;  %390 = vset.pattern.permute.xlu0 %v500_v9 }
  0x30   : > { %v179_v6 = vmax.f32 %v175_v3, %v176_v4  ;;  %v177_v8 = vld [vmem:[%s166_s24] sm:$0xff]  ;;  %v207_v28 = vand.u32 127, %v206_v26 }
  0x31   : > { %212 = vperm.xlu1 %389, %v177_v8  }
  0x32   : > { %v180_v7 = vmax.f32 %v178_v5, %v179_v6  ;;  %v208_v29 = vadd.s32 128, %v207_v28  ;;  %v209_v32 = vadd.s32 256, %v207_v28  ;;  %v210_v34 = vadd.s32 384, %v207_v28 }
  0x34   : > { %181 = vmax.xlane.f32.xlu0 %v180_v7  ;;  %v237_v61 = vld [vmem:[#allocation2] sm:$0x1] }
  0xa3   : > { %v213_v30 = vpop.permute.xlu1 %212 }
  0xa4   : > { %vm214_vm1 = vcmp.eq.s32.totalorder %v213_v30, %v207_v28  ;;  %vm215_vm2 = vcmp.eq.s32.totalorder %v213_v30, %v208_v29  ;;  %vm216_vm3 = vcmp.eq.s32.totalorder %v213_v30, %v209_v32  ;;  %vm217_vm4 = vcmp.eq.s32.totalorder %v213_v30, %v210_v34 }
  0xa7   : > { %v182_v10 = vpop.xlane.xlu0 %181 }
  0xa8   : > { %v183_v11 = vsub.f32 %v173_v1, %v182_v10  ;;  %v184_v12 = vsub.f32 %v174_v2, %v182_v10  ;;  %v185_v13 = vsub.f32 %v175_v3, %v182_v10  ;;  %v186_v14 = vsub.f32 %v176_v4, %v182_v10 }
  0xaa   : > { %v187_v15 = vmul.f32 1.442695, %v183_v11  ;;  %v189_v16 = vmul.f32 1.442695, %v184_v12  ;;  %v191_v17 = vmul.f32 1.442695, %v185_v13 }
  0xab   : > { %v193_v18 = vmul.f32 1.442695, %v186_v14 }
  0xac   : > { %391 = vpow2.f32 %v187_v15 }
  0xad   : > { %393 = vpow2.f32 %v189_v16 }
  0xae   : > { %395 = vpow2.f32 %v191_v17 }
  0xaf   : > { %397 = vpow2.f32 %v193_v18 }
  0xb2   : > { %v392_v19 = vpop.eup %391 }
  0xb3   : > { %v394_v20 = vpop.eup %393 }
  0xb4   : > { %v195_v21 = vadd.f32 %v394_v20, %v392_v19  ;;  %v396_v22 = vpop.eup %395 }
  0xb5   : > { %v398_v24 = vpop.eup %397 }
  0xb6   : > { %v196_v23 = vadd.f32 %v396_v22, %v195_v21 }
  0xb8   : > { %v197_v25 = vadd.f32 %v398_v24, %v196_v23 }
  0xba   : > { %198 = vadd.xlane.f32.xlu0 %v197_v25 }
 0x12d   : > { %v199_v27 = vpop.xlane.xlu0 %198 }
 0x12e   : > { %399 = vlog2.f32 %v199_v27 }
 0x134   : > { %v400_v31 = vpop.eup %399 }
 0x135   : > { %v201_v33 = vmul.f32 0.6931472, %v400_v31 }
 0x137   : > { %v202_v35 = vsub.f32 %v183_v11, %v201_v33  ;;  %v203_v36 = vsub.f32 %v184_v12, %v201_v33  ;;  %v204_v37 = vsub.f32 %v185_v13, %v201_v33  ;;  %v205_v38 = vsub.f32 %v186_v14, %v201_v33 }
 0x139   : > { %v227_v39 = vadd.f32 %v203_v36, %v202_v35  ;;  %v218_v40 = vsel %vm214_vm1, %v202_v35, 0.0  ;;  %v219_v41 = vsel %vm215_vm2, %v203_v36, 0.0  ;;  %v220_v44 = vsel %vm216_vm3, %v204_v37, 0.0 }
 0x13a   : > { %v222_v42 = vadd.f32 %v219_v41, %v218_v40  ;;  %v221_v47 = vsel %vm217_vm4, %v205_v38, 0.0 }
 0x13b   : > { %v228_v43 = vadd.f32 %v227_v39, %v204_v37 }
 0x13c   : > { %v223_v45 = vadd.f32 %v222_v42, %v220_v44 }
 0x13d   : > { %v229_v46 = vadd.f32 %v228_v43, %v205_v38 }
 0x13e   : > { %v224_v48 = vadd.f32 %v223_v45, %v221_v47 }
 0x13f   : > { %230 = vadd.xlane.f32.xlu2 %v229_v46 }
 0x140   : > { %225 = vadd.xlane.f32.xlu1 %v224_v48 }
 0x1b2   : > { %v231_v49 = vpop.xlane.xlu2 %230 }
 0x1b3   : > { %v226_v50 = vpop.xlane.xlu1 %225 }
 0x1b4   : > { %v232_v51 = vsub.f32 %v231_v49, %v226_v50  ;;  %v234_v53 = vmul.f32 0.9, %v226_v50 }
 0x1b6   : > { %v233_v52 = vmul.f32 0.00019569472, %v232_v51 }
 0x1b8   : > { %v235_v54 = vadd.f32 %v234_v53, %v233_v52 }
 0x1ba   : > { %v236_v55 = vsub.f32 0.0, %v235_v54 }
 0x1bc   : > { %v238_v56 = vrot.slane %v236_v55, 4 }
 0x1be   : > { %v239_v57 = vadd.f32 %v238_v56, %v236_v55 }
 0x1c0   : > { %v240_v58 = vrot.slane %v239_v57, 2 }
 0x1c2   : > { %v241_v59 = vadd.f32 %v240_v58, %v239_v57 }
 0x1c4   : > { %v242_v60 = vrot.slane %v241_v59, 1 }
 0x1c6   : > { %v243_v62 = vadd.f32 %v242_v60, %v241_v59  ;;  %250 = sbr.rel (%p335_p7) target bundleno = 469 (0x1d5), region = 40 }
 0x1c8   : > { %v244_v63 = vadd.f32 %v243_v62, %v237_v61 }
 0x1ca   : > { %246 = vst.msk [vmem:[#allocation2] sm:$0x1] %vm245_vm5, %v244_v63 }
 0x1d1   : > { %v251_v0 = vld [vmem:[#allocation2] sm:$0x1] }
 0x1d2   : > { %v252_v1 = vmul.f32 0.0625, %v251_v0 }
 0x1d4   : > { %253 = vst.msk [vmem:[#allocation6] sm:$0x1] %vm245_vm5, %v252_v1 }
 0x1d5 PF: > { %p352_p9 = scmp.eq.s32.totalorder %s536_s13, 1  ;;  %s501_s19 = smov [#allocation6]  }
 0x1d6   : > { %s260_s25 = sshll.u32 %s501_s19, 4  ;;  %s262_s28 = sshll.u32 %s619_s2, 4  ;;  %s261_s25 = int_to_ptr.vmem [resolvable:$true] %s260_s25  ;;  %s263_s28 = int_to_ptr.hbm [resolvable:$true] %s262_s28 }
 0x1d7   : > { %344 = dma.vmem_to_hbm [thread:$0]  (%p352_p9), %s261_s25, 16, %s263_s28, [#allocation5]  }
 0x1d8   : > { %480 = dma.done.wait (%p352_p9), [#allocation5], 16  }
 0x1d9   : > { %482 = vsyncadd (%p352_p9), [#allocation5], 4294967280 }
 0x1da PF: > { %p13_p10 = scmp.ge.s32.totalorder %s539_s14, 4   ;;  %s623_s9 = smov %s489_s10 }
 0x1db   : > { %s624_s10 = smov %s493_s11  ;;  %s625_s11 = smov %s549_s17 }
 0x1dc   : > { %s626_s12 = smov %s539_s14  ;;  %15 = sbr.rel (!%p13_p10) target bundleno = 4 (0x4), region = 76 }
 0x1e1   :  { %276 = vsyncpa [#allocation4], 1 }
 0x1e2   :  { %278 = vsyncpa [#allocation4 + $0x1], 1 }
 0x1e3   :  { %279 = vsyncpa [#allocation5], 1 }
 0x1e4   :  { %281 = vsyncpa [#allocation5 + $0x1], 1 }

</bundles_post_ra>
